<compile_context>
chip_gen: v5e
topology: v5e:2x2
jax: 0.10.0
libtpu: 0.0.40
codegen_flags: <defaults>
</compile_context>

<pallas_src>
import functools

import jax
import jax.numpy as jnp
from jax.experimental import pallas as pl
from jax.experimental.pallas import tpu as pltpu


def _rmsnorm_kernel(x_ref, w_ref, o_ref, *, eps, inv_d, f32_tail):
    # x_ref: (TM, D) tile of rows; w_ref: (1, D); o_ref: (TM, D)
    x = x_ref[...]
    xf = x.astype(jnp.float32)
    ss = jnp.sum(xf * xf, axis=-1, keepdims=True)          # (TM, 1) f32
    inv_rms = jax.lax.rsqrt(ss * inv_d + eps)               # (TM, 1), EUP rsqrt
    if f32_tail:
        w = w_ref[...].astype(jnp.float32)                   # (1, D)
        o_ref[...] = (xf * inv_rms * w).astype(o_ref.dtype)
    else:
        # Sub-32-bit float I/O: do the scale tail with the native-dtype VALU.
        w = w_ref[...].astype(x.dtype)
        o_ref[...] = (x * w * inv_rms.astype(x.dtype)).astype(o_ref.dtype)


def _round_up(x: int, m: int) -> int:
    return ((x + m - 1) // m) * m


def _sublane_multiple(dtype) -> int:
    # (8,128) vreg packs sub-32-bit dtypes along sublanes: f32->8, bf16->16, int8->32
    return max(8, 32 // max(1, jnp.dtype(dtype).itemsize))


def _vmem_capacity_bytes() -> int:
    """Physical VMEM capacity of the local TensorCore (conservative fallback)."""
    try:
        return int(pltpu.get_tpu_info().vmem_capacity_bytes)
    except Exception:
        pass
    try:
        kind = jax.devices()[0].device_kind.lower()
        if ("v5 lite" in kind) or ("v5e" in kind) or ("v6" in kind):
            return 128 << 20
    except Exception:
        pass
    return 64 << 20  # conservative default (covers v7x's 64 MiB per TC)


def _pick_row_tile(n_rows: int, d_padded: int, dtype, footprint_budget: int) -> int:
    sub = _sublane_multiple(dtype)
    itemsize = jnp.dtype(dtype).itemsize
    # Footprint per tile row: double-buffered input + output tiles plus
    # ~8 B/elem headroom for the in-kernel f32 temporaries.
    per_row_bytes = d_padded * (4 * itemsize + 8)
    tm = max(sub, (footprint_budget // per_row_bytes) // sub * sub)
    # Keep at least ~8 grid steps when the row count allows: restores DMA/compute
    # pipelining and gives every TensorCore several blocks on multi-core chips.
    min_steps = 8
    if n_rows >= min_steps * sub:
        tm = min(tm, _round_up(pl.cdiv(n_rows, min_steps), sub))
    tm = min(tm, _round_up(n_rows, sub))
    return max(tm, sub)


def rms_norm(activations: jnp.ndarray, weight: jnp.ndarray, eps: float = 1e-05) -> jnp.ndarray:
    """RMSNorm matching the PyTorch module's forward semantics.

    activations: (*, d_model)
    weight:      (d_model,)
    """
    orig_shape = activations.shape
    d_model = orig_shape[-1]
    x2d = activations.reshape(-1, d_model)
    n_rows = x2d.shape[0]

    # Lane-density guard: pad the feature dim to a multiple of 128 so stores are
    # full-vreg. Zero pad columns leave sum(x*x) unchanged; sliced off after.
    d_pad = _round_up(d_model, 128)
    if d_pad != d_model:
        x2d = jnp.pad(x2d, ((0, 0), (0, d_pad - d_model)))
        w2d = jnp.pad(weight, (0, d_pad - d_model)).reshape(1, d_pad)
    else:
        w2d = weight.reshape(1, d_pad)

    vmem_cap = _vmem_capacity_bytes()
    vmem_limit = min(64 << 20, vmem_cap // 2)       # 64 MiB on 128-MiB parts, 32 MiB on v7x
    footprint_budget = vmem_limit // 2              # headroom: weight buffers + compiler scratch

    tm = _pick_row_tile(n_rows, d_pad, activations.dtype, footprint_budget)

    io_dtype = jnp.dtype(activations.dtype)
    f32_tail = io_dtype not in (jnp.dtype(jnp.bfloat16), jnp.dtype(jnp.float16))
    kernel = functools.partial(
        _rmsnorm_kernel, eps=eps, inv_d=1.0 / d_model, f32_tail=f32_tail
    )

    out = pl.pallas_call(
        kernel,
        out_shape=jax.ShapeDtypeStruct((n_rows, d_pad), activations.dtype),
        grid_spec=pltpu.PrefetchScalarGridSpec(
            num_scalar_prefetch=0,
            grid=(pl.cdiv(n_rows, tm),),
            in_specs=[
                pl.BlockSpec((tm, d_pad), lambda i: (i, 0)),
                pl.BlockSpec((1, d_pad), lambda i: (0, 0)),  # weight stays resident
            ],
            out_specs=pl.BlockSpec((tm, d_pad), lambda i: (i, 0)),
        ),
        compiler_params=pltpu.CompilerParams(
            dimension_semantics=("parallel",),
            vmem_limit_bytes=vmem_limit,
        ),
    )(x2d, w2d)

    if d_pad != d_model:
        out = out[:, :d_model]
    return out.reshape(orig_shape)


if __name__ == "__main__":
    key = jax.random.PRNGKey(0)

    # Small f32 case (exercises the lane-padding path: d_model=32 < 128).
    batch, seq, d_model = 2, 8, 32
    x = jax.random.normal(key, (batch, seq, d_model), dtype=jnp.float32)
    weight = jnp.ones((d_model,), dtype=jnp.float32)  # nn.Parameter(torch.ones(d_model))

    y = rms_norm(x, weight, eps=1e-05)
    y = jax.block_until_ready(y)

    ref = x * jax.lax.rsqrt(jnp.mean(x * x, axis=-1, keepdims=True) + 1e-05) * weight
    assert y.shape == x.shape
    assert jnp.allclose(y, ref, atol=1e-5, rtol=1e-5), "f32 mismatch vs reference"

    # Small bf16 case (exercises the native-dtype scale tail, no padding needed).
    d2 = 256
    xb = jax.random.normal(jax.random.PRNGKey(1), (4, 8, d2), dtype=jnp.bfloat16)
    wb = jnp.ones((d2,), dtype=jnp.bfloat16)
    yb = jax.block_until_ready(rms_norm(xb, wb, eps=1e-05))
    xf = xb.astype(jnp.float32)
    refb = xf * jax.lax.rsqrt(jnp.mean(xf * xf, axis=-1, keepdims=True) + 1e-05)
    assert yb.shape == xb.shape
    assert jnp.allclose(yb.astype(jnp.float32), refb, atol=3e-2, rtol=3e-2), "bf16 mismatch"

    print("KERNEL_OK")
</pallas_src>

<mosaic_0001>
module attributes {stable_mosaic.version = 11 : i64} {
  func.func @_rmsnorm_kernel(%arg0: i32, %arg1: memref<16x128xf32, #tpu.memory_space<vmem>>, %arg2: memref<1x128xf32, #tpu.memory_space<vmem>>, %arg3: memref<16x128xf32, #tpu.memory_space<vmem>>) attributes {dimension_semantics = [#tpu.dimension_semantics<parallel>], iteration_bounds = array<i64: 1>, scalar_prefetch = 0 : i64, scratch_operands = 0 : i64, tpu.core_type = #tpu.core_type<tc>, window_params = [{transform_indices = @transform_0, window_bounds = array<i64: 16, 128>}, {pipeline_mode = #tpu.pipeline_mode<synchronous>, transform_indices = @transform_1, window_bounds = array<i64: 1, 128>}, {transform_indices = @transform_2, window_bounds = array<i64: 16, 128>}]} {
    %c0 = arith.constant 0 : index
    %c0_0 = arith.constant 0 : index
    %0 = vector.load %arg1[%c0, %c0_0] : memref<16x128xf32, #tpu.memory_space<vmem>>, vector<16x128xf32>
    %1 = arith.mulf %0, %0 : vector<16x128xf32>
    %cst = arith.constant dense<0.000000e+00> : vector<16xf32>
    %2 = vector.multi_reduction <add>, %1, %cst [1] : vector<16x128xf32> to vector<16xf32>
    %3 = vector.shape_cast %2 : vector<16xf32> to vector<16x1xf32>
    %cst_1 = arith.constant 3.125000e-02 : f32
    %4 = vector.broadcast %cst_1 : f32 to vector<16x1xf32>
    %5 = arith.mulf %3, %4 : vector<16x1xf32>
    %cst_2 = arith.constant 9.99999974E-6 : f32
    %6 = vector.broadcast %cst_2 : f32 to vector<16x1xf32>
    %7 = arith.addf %5, %6 : vector<16x1xf32>
    %8 = math.rsqrt %7 : vector<16x1xf32>
    %c0_3 = arith.constant 0 : index
    %c0_4 = arith.constant 0 : index
    %9 = vector.load %arg2[%c0_3, %c0_4] : memref<1x128xf32, #tpu.memory_space<vmem>>, vector<1x128xf32>
    %10 = vector.broadcast %8 : vector<16x1xf32> to vector<16x128xf32>
    %11 = arith.mulf %0, %10 : vector<16x128xf32>
    %12 = vector.broadcast %9 : vector<1x128xf32> to vector<16x128xf32>
    %13 = arith.mulf %11, %12 : vector<16x128xf32>
    %c0_5 = arith.constant 0 : index
    %c0_6 = arith.constant 0 : index
    %14 = vector.load %arg3[%c0_5, %c0_6] : memref<16x128xf32, #tpu.memory_space<vmem>>, vector<16x128xf32>
    tpu.vector_store %arg3[%c0_5, %c0_6], %13 {strides = array<i32>} : memref<16x128xf32, #tpu.memory_space<vmem>>, vector<16x128xf32>,
    return
  }
  func.func @transform_0(%arg0: i32) -> (i32, i32) {
    %c0_i32 = arith.constant 0 : i32
    %c0_i32_0 = arith.constant 0 : i32
    return %arg0, %c0_i32 : i32, i32
  }
  func.func @transform_1(%arg0: i32) -> (i32, i32) {
    %c0_i32 = arith.constant 0 : i32
    %c0_i32_0 = arith.constant 0 : i32
    %c0_i32_1 = arith.constant 0 : i32
    return %c0_i32, %c0_i32_0 : i32, i32
  }
  func.func @transform_2(%arg0: i32) -> (i32, i32) {
    %c0_i32 = arith.constant 0 : i32
    %c0_i32_0 = arith.constant 0 : i32
    return %arg0, %c0_i32 : i32, i32
  }
}

</mosaic_0001>

<bundles_post_ra>
// kernel: tpu_custom_call.1
= control target key start
LH: loop header
LB: loop body
LE: loop exit
PB: predicated region body
PF: predicated region fallthrough
CT: control target
= control target key end

     0   :  { %7 = vsyncpa [#allocation3], 0  ;;  %s227_s0 = inlined_call_operand.hbm [shape: f32[16,128], index: 0, kind: input, shape index: {}]   ;;  %s228_s1 = inlined_call_operand.hbm [shape: f32[1,128], index: 1, kind: input, shape index: {}]   ;;  %s229_s2 = inlined_call_operand.hbm [shape: f32[16,128], index: 2, kind: output, shape index: {}]  }
   0x1   :  { %8 = vsyncpa [#allocation6], 0 }
   0x2   :  { %9 = vsyncpa [#allocation4], 0  ;;  %s14_s11 = sshll.u32 %s227_s0, 4  ;;  %s192_s12 = smov [#allocation2]   ;;  %s15_s11 = int_to_ptr.hbm [resolvable:$true] %s14_s11 }
   0x3   :  { %s16_s13 = sshll.u32 %s192_s12, 4  ;;  %s28_s16 = sshll.u32 %s228_s1, 4  ;;  %s17_s13 = int_to_ptr.vmem [resolvable:$true] %s16_s13  ;;  %s29_s16 = int_to_ptr.hbm [resolvable:$true] %s28_s16 }
   0x4   :  { %s193_s17 = smov 128   ;;  %s194_s18 = smov 8  }
   0x5   :  { %22 = dma.hbm_to_vmem [thread:$0]  %s15_s11, 256, %s17_s13, [#allocation3], %s193_s17, %s193_s17, %s194_s18  }
   0x6   :  { %s195_s19 = smov [#allocation5]  }
   0x7   :  { %s30_s20 = sshll.u32 %s195_s19, 4  ;;  %s31_s20 = int_to_ptr.vmem [resolvable:$true] %s30_s20 }
   0x8   :  { %33 = dma.hbm_to_vmem [thread:$0]  %s29_s16, 16, %s31_s20, [#allocation6]  }
   0x9   :  { %186 = dma.done.wait [#allocation3], 256  }
   0xa   :  { %187 = vsyncadd [#allocation3], 4294967040 }
   0xb   :  { %188 = dma.done.wait [#allocation6], 16  }
   0xc   :  { %189 = vsyncadd [#allocation6], 4294967280  ;;  %v42_v0 = vld [vmem:[#allocation2] sm:$0xff]  ;;  %v43_v2 = vld [vmem:[#allocation2 + $0x8] sm:$0xff]  ;;  %s196_s0 = smov [#allocation7]   ;;  %s90_s23 = sshll.u32 %s229_s2, 4  ;;  %s91_s23 = int_to_ptr.hbm [resolvable:$true] %s90_s23 }
   0xd   :  { %v44_v1 = vmul.f32 %v42_v0, %v42_v0  ;;  %v45_v3 = vmul.f32 %v43_v2, %v43_v2  ;;  %v109_v18 = vld [vmem:[#allocation5] ss:$0 sm:$0xff]  ;;  %s88_s1 = sshll.u32 %s196_s0, 4  ;;  %s89_s1 = int_to_ptr.vmem [resolvable:$true] %s88_s1 }
   0xf   :  { %46 = vadd.xlane.f32.xlu0 %v44_v1 }
  0x17   :  { %48 = vadd.xlane.f32.xlu0 %v45_v3 }
  0x82   :  { %v47_v4 = vpop.xlane.xlu0 %46 }
  0x83   :  { %v50_v5 = vmul.f32 0.03125, %v47_v4 }
  0x85   :  { %v52_v6 = vadd.f32 1e-05, %v50_v5 }
  0x87   :  { %110 = vrsqrt.f32 %v52_v6  ;;  %vm60_vm1 = vweird.f32 %v52_v6 }
  0x8a   :  { %v49_v7 = vpop.xlane.xlu0 %48 }
  0x8b   :  { %v51_v8 = vmul.f32 0.03125, %v49_v7 }
  0x8d   :  { %v111_v9 = vpop.eup %110  ;;  %v53_v10 = vadd.f32 1e-05, %v51_v8 }
  0x8e   :  { %v55_v11 = vmul.f32 %v111_v9, %v52_v6  ;;  %vm61_vm0 = vweird.f32 %v111_v9 }
  0x8f   :  { %112 = vrsqrt.f32 %v53_v10  ;;  %vm62_vm2 = vmor %vm60_vm1, %vm61_vm0  ;;  %vm70_vm4 = vweird.f32 %v53_v10 }
  0x90   :  { %v56_v12 = vmul.f32 %v111_v9, %v55_v11 }
  0x92   :  { %v57_v13 = vmul.f32 0.5, %v56_v12 }
  0x94   :  { %v58_v14 = vsub.f32 1.5, %v57_v13 }
  0x95   :  { %v113_v15 = vpop.eup %112 }
  0x96   :  { %v59_v16 = vmul.f32 %v111_v9, %v58_v14  ;;  %v65_v17 = vmul.f32 %v113_v15, %v53_v10  ;;  %vm71_vm3 = vweird.f32 %v113_v15 }
  0x97   :  { %vm72_vm5 = vmor %vm70_vm4, %vm71_vm3 }
  0x98   :  { %v63_v19 = vsel %vm62_vm2, %v111_v9, %v59_v16  ;;  %v66_v20 = vmul.f32 %v113_v15, %v65_v17 }
  0x99   :  { %v75_v21 = vmul.f32 %v63_v19, %v42_v0 }
  0x9a   :  { %v67_v22 = vmul.f32 0.5, %v66_v20 }
  0x9b   :  { %v80_v23 = vmul.f32 %v109_v18, %v75_v21 }
  0x9c   :  { %v68_v24 = vsub.f32 1.5, %v67_v22 }
  0x9d   :  { %82 = vst [vmem:[#allocation7] sm:$0xff] %v80_v23 }
  0x9e   :  { %v69_v25 = vmul.f32 %v113_v15, %v68_v24 }
  0xa0   :  { %v73_v26 = vsel %vm72_vm5, %v113_v15, %v69_v25 }
  0xa1   :  { %v76_v27 = vmul.f32 %v73_v26, %v43_v2 }
  0xa3   :  { %v81_v28 = vmul.f32 %v109_v18, %v76_v27 }
  0xa5   :  { %83 = vst [vmem:[#allocation7 + $0x8] sm:$0xff] %v81_v28 }
  0xa6   :  { %96 = dma.vmem_to_hbm [thread:$0]  %s89_s1, 256, %s91_s23, [#allocation4], %s193_s17, %s193_s17, %s194_s18  }
  0xa7   :  { %190 = dma.done.wait [#allocation4], 256  }
  0xa8   :  { %191 = vsyncadd [#allocation4], 4294967040 }
  0xa9   :  { %101 = vsyncpa [#allocation3], 1 }
  0xaa   :  { %102 = vsyncpa [#allocation6], 1 }
  0xab   :  { %103 = vsyncpa [#allocation4], 1 }

</bundles_post_ra>
